<compile_context>
chip_gen: v7x
topology: tpu7x:2x2x1
jax: 0.10.0
libtpu: 0.0.40
codegen_flags: <defaults>
</compile_context>

<pallas_src>
import functools

import jax
import jax.numpy as jnp
import numpy as np
from jax.experimental import pallas as pl
from jax.experimental.pallas import tpu as pltpu


def _round_up(x, m):
    return (x + m - 1) // m * m


# --------------------------------------------------------------- kernels -----

def _conv_stats_kernel(pT_ref, wT_ref, b_ref, y_ref, s_ref, ss_ref, *,
                       hwo, t, needs_mask):
    """Conv (im2col matmul) + bias -> unnormalized y^T; BN partial sums.

    Partial sums are taken from the PRE-BIAS f32 matmul result so the constant
    channel offset is never squared into sum_sq; the wrapper adds the bias back
    to the mean (variance is unaffected by a constant shift).
    """
    mm = jnp.dot(wT_ref[...], pT_ref[...],
                 preferred_element_type=jnp.float32)              # (Cout, T)
    if needs_mask:
        col = (jax.lax.broadcasted_iota(jnp.int32, mm.shape, 1)
               + pl.program_id(1) * t)
        mm_m = jnp.where(col < hwo, mm, 0.0)
    else:
        mm_m = mm
    s_ref[...] = jnp.sum(mm_m, axis=1, keepdims=True)             # (Cout, 1)
    ss_ref[...] = jnp.sum(mm_m * mm_m, axis=1, keepdims=True)     # (Cout, 1)
    y_ref[...] = (mm + b_ref[...]).astype(y_ref.dtype)


def _bn_act_kernel(y_ref, scale_ref, shift_ref, o_ref, *, negative_slope):
    # Fused affine BatchNorm (scale/shift precomputed) + LeakyReLU, pure VPU.
    y = y_ref[...].astype(jnp.float32) * scale_ref[...] + shift_ref[...]
    o_ref[...] = jnp.maximum(y, negative_slope * y).astype(o_ref.dtype)


def _conv_act_kernel(pT_ref, wT_ref, b_ref, o_ref, *, negative_slope):
    # norm=False path: conv + bias + LeakyReLU fused, single HBM write.
    acc = jnp.dot(wT_ref[...], pT_ref[...],
                  preferred_element_type=jnp.float32) + b_ref[...]
    o_ref[...] = jnp.maximum(acc, negative_slope * acc).astype(o_ref.dtype)


# ----------------------------------------------------------- tile sizing -----

def _column_tile(K, Cout, hwo, n_batch):
    """VMEM-budgeted, generation-aware column tile (multiple of 128)."""
    try:
        vmem_cap = int(pltpu.get_tpu_info().vmem_capacity_bytes)
    except Exception:
        vmem_cap = 64 * 1024 * 1024                 # v7x-conservative fallback
    vmem_limit = min(vmem_cap * 3 // 4, 100 * 1024 * 1024)
    # Double-buffered per-column bytes: bf16 (K,T) patches + (worst-case f32)
    # (Cout,T) output block.
    per_col = 4 * K + 8 * Cout
    t = (vmem_limit // 2) // per_col // 128 * 128
    t = max(128, min(t, 8192))
    t = min(t, _round_up(hwo, 128))
    # v7x has 2 TensorCores per chip: keep >=2 grid steps when there is work.
    if n_batch == 1 and hwo > 128 and t >= _round_up(hwo, 128):
        t = _round_up(-(-hwo // 2), 128)
    return t, int(vmem_limit)


# ------------------------------------------------------------- forward -------

def ck_forward(x_nchw, w_oihw, bias, gamma=None, beta=None, *,
               stride: int, norm: bool, eps: float = 1e-5,
               negative_slope: float = 0.2):
    """Forward pass of `ck`. Input and output are NCHW (PyTorch convention)."""
    N, Cin, H, W = x_nchw.shape
    Cout = w_oihw.shape[0]
    Ho = (H + 2 - 3) // stride + 1
    Wo = (W + 2 - 3) // stride + 1
    HWo = Ho * Wo
    K = 9 * Cin
    M_total = N * HWo

    # ---- XLA glue: bf16 im2col, per image, channels-first --------------------
    # TODO(synk): build the 9 taps inside the kernel from a halo'd padded-NHWC
    # block (manual DMA / Element offsets) so the 9x-expanded patch tensor is
    # never materialized in HBM; the bf16 materialization below already halves
    # that traffic vs the previous f32 version.
    x = jnp.transpose(x_nchw, (0, 2, 3, 1)).astype(jnp.bfloat16)   # NHWC bf16
    xp = jnp.pad(x, ((0, 0), (1, 1), (1, 1), (0, 0)))
    taps = []
    for ky in range(3):
        for kx in range(3):
            taps.append(xp[:, ky:ky + (Ho - 1) * stride + 1:stride,
                              kx:kx + (Wo - 1) * stride + 1:stride, :])
    patches = jnp.stack(taps, axis=1)                     # (N, 9, Ho, Wo, Cin)
    patchesT = jnp.transpose(patches, (0, 1, 4, 2, 3)).reshape(N, K, HWo)

    T, vmem_limit = _column_tile(K, Cout, HWo, N)
    HWo_pad = _round_up(HWo, T)
    n_tiles = HWo_pad // T
    if HWo_pad > HWo:
        patchesT = jnp.pad(patchesT, ((0, 0), (0, 0), (0, HWo_pad - HWo)))

    wT = jnp.transpose(w_oihw, (0, 2, 3, 1)).reshape(Cout, K).astype(jnp.bfloat16)
    b2 = bias.reshape(Cout, 1).astype(jnp.float32)
    out_dtype = x_nchw.dtype

    grid = (N, n_tiles)
    p_spec = pl.BlockSpec((None, K, T), lambda n, j: (n, 0, j))
    w_spec = pl.BlockSpec((Cout, K), lambda n, j: (0, 0))
    c_spec = pl.BlockSpec((Cout, 1), lambda n, j: (0, 0))    # bias/scale/shift
    y_spec = pl.BlockSpec((None, Cout, T), lambda n, j: (n, 0, j))
    cparams = pltpu.CompilerParams(
        dimension_semantics=("parallel", "parallel"),
        vmem_limit_bytes=vmem_limit)

    # NOTE: K stays a single block; the VMEM-budgeted T already bounds the
    # (K, T) strip for deep layers.  (A K grid axis + accumulator would only
    # matter for extreme K on v7x.)
    if norm:
        # bf16 intermediate only when Cout fills a bf16 sublane tile (>=16);
        # statistics are always computed from the f32 matmul before the cast.
        y_dtype = jnp.bfloat16 if Cout >= 16 else jnp.float32
        stats_spec = pl.BlockSpec((None, Cout, 1),
                                  lambda n, j: (n * n_tiles + j, 0, 0))
        kernel1 = functools.partial(_conv_stats_kernel, hwo=HWo, t=T,
                                    needs_mask=(HWo_pad > HWo))
        yT, s_part, ss_part = pl.pallas_call(
            kernel1,
            grid=grid,
            in_specs=[p_spec, w_spec, c_spec],
            out_specs=(y_spec, stats_spec, stats_spec),
            out_shape=(jax.ShapeDtypeStruct((N, Cout, HWo_pad), y_dtype),
                       jax.ShapeDtypeStruct((N * n_tiles, Cout, 1), jnp.float32),
                       jax.ShapeDtypeStruct((N * n_tiles, Cout, 1), jnp.float32)),
            compiler_params=cparams,
        )(patchesT, wT, b2)

        # Tiny finalize on (Cout,1) vectors: batch stats + fused affine.
        s = jnp.sum(s_part, axis=0)                        # pre-bias sums
        ss = jnp.sum(ss_part, axis=0)
        mean_mm = s / M_total
        var = jnp.maximum(ss / M_total - mean_mm * mean_mm, 0.0)  # biased var
        mean = mean_mm + b2                                # add bias back
        scale = gamma.reshape(Cout, 1).astype(jnp.float32) * jax.lax.rsqrt(var + eps)
        shift = beta.reshape(Cout, 1).astype(jnp.float32) - mean * scale

        kernel2 = functools.partial(_bn_act_kernel, negative_slope=negative_slope)
        o = pl.pallas_call(
            kernel2,
            grid=grid,
            in_specs=[y_spec, c_spec, c_spec],
            out_specs=y_spec,
            out_shape=jax.ShapeDtypeStruct((N, Cout, HWo_pad), out_dtype),
            compiler_params=cparams,
        )(yT, scale, shift)
    else:
        kernel1 = functools.partial(_conv_act_kernel, negative_slope=negative_slope)
        o = pl.pallas_call(
            kernel1,
            grid=grid,
            in_specs=[p_spec, w_spec, c_spec],
            out_specs=y_spec,
            out_shape=jax.ShapeDtypeStruct((N, Cout, HWo_pad), out_dtype),
            compiler_params=cparams,
        )(patchesT, wT, b2)

    # Output is already (N, Cout, Ho*Wo): reshape only, no transpose.
    if HWo_pad > HWo:
        o = o[:, :, :HWo]
    return o.reshape(N, Cout, Ho, Wo)


# ------------------------------------------------------------- reference -----

def _reference(x_nchw, w_oihw, bias, gamma, beta, *, stride, norm):
    y = jax.lax.conv_general_dilated(
        x_nchw.astype(jnp.float32), w_oihw.astype(jnp.float32),
        window_strides=(stride, stride), padding=((1, 1), (1, 1)),
        dimension_numbers=("NCHW", "OIHW", "NCHW"))
    y = y + bias.reshape(1, -1, 1, 1)
    if norm:
        mean = y.mean(axis=(0, 2, 3), keepdims=True)
        var = ((y - mean) ** 2).mean(axis=(0, 2, 3), keepdims=True)
        y = (y - mean) / jnp.sqrt(var + 1e-5)
        y = y * gamma.reshape(1, -1, 1, 1) + beta.reshape(1, -1, 1, 1)
    return jnp.where(y > 0, y, 0.2 * y)


if __name__ == "__main__":
    key = jax.random.PRNGKey(0)
    kx, kw, kb = jax.random.split(key, 3)

    # Module config: ck(inc=4, outc=8, stride=2, norm=True)
    N, inc, outc, H, W, stride = 2, 4, 8, 16, 16, 2
    x = jax.random.normal(kx, (N, inc, H, W), dtype=jnp.float32)
    w = jax.random.normal(kw, (outc, inc, 3, 3), dtype=jnp.float32) * 0.1
    b = jax.random.normal(kb, (outc,), dtype=jnp.float32) * 0.1
    gamma = jnp.ones((outc,), dtype=jnp.float32)   # BatchNorm2d weight init
    beta = jnp.zeros((outc,), dtype=jnp.float32)   # BatchNorm2d bias init

    y = jax.block_until_ready(
        ck_forward(x, w, b, gamma, beta, stride=stride, norm=True))
    y_ref = _reference(x, w, b, gamma, beta, stride=stride, norm=True)
    # bf16 MXU operands / bf16 im2col -> slightly looser tolerance than f32.
    np.testing.assert_allclose(np.asarray(y), np.asarray(y_ref),
                               atol=3e-2, rtol=3e-2)

    # Also exercise the norm=False (Identity) configuration of ck, stride=1.
    y2 = jax.block_until_ready(ck_forward(x, w, b, stride=1, norm=False))
    y2_ref = _reference(x, w, b, gamma, beta, stride=1, norm=False)
    np.testing.assert_allclose(np.asarray(y2), np.asarray(y2_ref),
                               atol=3e-2, rtol=3e-2)

    print("KERNEL_OK")
</pallas_src>

<mosaic_0001>
module attributes {stable_mosaic.version = 11 : i64} {
  func.func @_conv_stats_kernel(%arg0: i32, %arg1: i32, %arg2: memref<1x36x128xbf16, #tpu.memory_space<vmem>>, %arg3: memref<8x36xbf16, #tpu.memory_space<vmem>>, %arg4: memref<8x1xf32, #tpu.memory_space<vmem>>, %arg5: memref<1x8x128xf32, #tpu.memory_space<vmem>>, %arg6: memref<1x8x1xf32, #tpu.memory_space<vmem>>, %arg7: memref<1x8x1xf32, #tpu.memory_space<vmem>>) attributes {dimension_semantics = [#tpu.dimension_semantics<parallel>, #tpu.dimension_semantics<parallel>], iteration_bounds = array<i64: 2, 1>, scalar_prefetch = 0 : i64, scratch_operands = 0 : i64, tpu.core_type = #tpu.core_type<tc>, window_params = [{transform_indices = @transform_0, window_bounds = array<i64: 1, 36, 128>}, {pipeline_mode = #tpu.pipeline_mode<synchronous>, transform_indices = @transform_1, window_bounds = array<i64: 8, 36>}, {pipeline_mode = #tpu.pipeline_mode<synchronous>, transform_indices = @transform_2, window_bounds = array<i64: 8, 1>}, {transform_indices = @transform_3, window_bounds = array<i64: 1, 8, 128>}, {transform_indices = @transform_4, window_bounds = array<i64: 1, 8, 1>}, {transform_indices = @transform_5, window_bounds = array<i64: 1, 8, 1>}]} {
    %c0 = arith.constant 0 : index
    %c0_0 = arith.constant 0 : index
    %0 = vector.load %arg3[%c0, %c0_0] : memref<8x36xbf16, #tpu.memory_space<vmem>>, vector<8x36xbf16>
    %c0_1 = arith.constant 0 : index
    %c0_2 = arith.constant 0 : index
    %c0_3 = arith.constant 0 : index
    %1 = vector.load %arg2[%c0_1, %c0_2, %c0_3] : memref<1x36x128xbf16, #tpu.memory_space<vmem>>, vector<1x36x128xbf16>
    %2 = vector.shape_cast %1 : vector<1x36x128xbf16> to vector<36x128xbf16>
    %cst = arith.constant dense<0.000000e+00> : vector<8x128xf32>
    %3 = tpu.matmul %0, %2, %cst {dimension_numbers = #tpu.dot_dimension_numbers<[1], [0], [0], [1], [0, 0, 1, 1], [], []>} : vector<8x36xbf16>, vector<36x128xbf16>, vector<8x128xf32> -> vector<8x128xf32>
    %4 = tpu.iota {dimensions = array<i32: 1>} : vector<8x128xi32>
    %c128_i32 = arith.constant 128 : i32
    %5 = arith.muli %arg1, %c128_i32 : i32
    %6 = vector.broadcast %5 : i32 to vector<8x128xi32>
    %7 = arith.addi %4, %6 : vector<8x128xi32>
    %c64_i32 = arith.constant 64 : i32
    %8 = vector.broadcast %c64_i32 : i32 to vector<8x128xi32>
    %9 = arith.cmpi slt, %7, %8 : vector<8x128xi32>
    %cst_4 = arith.constant 0.000000e+00 : f32
    %10 = vector.broadcast %cst_4 : f32 to vector<8x128xf32>
    %11 = arith.select %9, %3, %10 : vector<8x128xi1>, vector<8x128xf32>
    %cst_5 = arith.constant dense<0.000000e+00> : vector<8xf32>
    %12 = vector.multi_reduction <add>, %11, %cst_5 [1] : vector<8x128xf32> to vector<8xf32>
    %13 = vector.shape_cast %12 : vector<8xf32> to vector<8x1xf32>
    %c0_6 = arith.constant 0 : index
    %c0_7 = arith.constant 0 : index
    %c0_8 = arith.constant 0 : index
    %14 = vector.load %arg6[%c0_6, %c0_7, %c0_8] : memref<1x8x1xf32, #tpu.memory_space<vmem>>, vector<1x8x1xf32>
    %15 = vector.shape_cast %14 : vector<1x8x1xf32> to vector<8x1xf32>
    %16 = vector.shape_cast %13 : vector<8x1xf32> to vector<1x8x1xf32>
    tpu.vector_store %arg6[%c0_6, %c0_7, %c0_8], %16 {strides = array<i32>} : memref<1x8x1xf32, #tpu.memory_space<vmem>>, vector<1x8x1xf32>,
    %17 = arith.mulf %11, %11 : vector<8x128xf32>
    %cst_9 = arith.constant dense<0.000000e+00> : vector<8xf32>
    %18 = vector.multi_reduction <add>, %17, %cst_9 [1] : vector<8x128xf32> to vector<8xf32>
    %19 = vector.shape_cast %18 : vector<8xf32> to vector<8x1xf32>
    %c0_10 = arith.constant 0 : index
    %c0_11 = arith.constant 0 : index
    %c0_12 = arith.constant 0 : index
    %20 = vector.load %arg7[%c0_10, %c0_11, %c0_12] : memref<1x8x1xf32, #tpu.memory_space<vmem>>, vector<1x8x1xf32>
    %21 = vector.shape_cast %20 : vector<1x8x1xf32> to vector<8x1xf32>
    %22 = vector.shape_cast %19 : vector<8x1xf32> to vector<1x8x1xf32>
    tpu.vector_store %arg7[%c0_10, %c0_11, %c0_12], %22 {strides = array<i32>} : memref<1x8x1xf32, #tpu.memory_space<vmem>>, vector<1x8x1xf32>,
    %c0_13 = arith.constant 0 : index
    %c0_14 = arith.constant 0 : index
    %23 = vector.load %arg4[%c0_13, %c0_14] : memref<8x1xf32, #tpu.memory_space<vmem>>, vector<8x1xf32>
    %24 = vector.broadcast %23 : vector<8x1xf32> to vector<8x128xf32>
    %25 = arith.addf %3, %24 : vector<8x128xf32>
    %c0_15 = arith.constant 0 : index
    %c0_16 = arith.constant 0 : index
    %c0_17 = arith.constant 0 : index
    %26 = vector.load %arg5[%c0_15, %c0_16, %c0_17] : memref<1x8x128xf32, #tpu.memory_space<vmem>>, vector<1x8x128xf32>
    %27 = vector.shape_cast %26 : vector<1x8x128xf32> to vector<8x128xf32>
    %28 = vector.shape_cast %25 : vector<8x128xf32> to vector<1x8x128xf32>
    tpu.vector_store %arg5[%c0_15, %c0_16, %c0_17], %28 {strides = array<i32>} : memref<1x8x128xf32, #tpu.memory_space<vmem>>, vector<1x8x128xf32>,
    return
  }
  func.func @transform_0(%arg0: i32, %arg1: i32) -> (i32, i32, i32) {
    %c0_i32 = arith.constant 0 : i32
    %c0_i32_0 = arith.constant 0 : i32
    return %arg0, %c0_i32, %arg1 : i32, i32, i32
  }
  func.func @transform_1(%arg0: i32, %arg1: i32) -> (i32, i32) {
    %c0_i32 = arith.constant 0 : i32
    %c0_i32_0 = arith.constant 0 : i32
    %c0_i32_1 = arith.constant 0 : i32
    return %c0_i32, %c0_i32_0 : i32, i32
  }
  func.func @transform_2(%arg0: i32, %arg1: i32) -> (i32, i32) {
    %c0_i32 = arith.constant 0 : i32
    %c0_i32_0 = arith.constant 0 : i32
    %c0_i32_1 = arith.constant 0 : i32
    return %c0_i32, %c0_i32_0 : i32, i32
  }
  func.func @transform_3(%arg0: i32, %arg1: i32) -> (i32, i32, i32) {
    %c0_i32 = arith.constant 0 : i32
    %c0_i32_0 = arith.constant 0 : i32
    return %arg0, %c0_i32, %arg1 : i32, i32, i32
  }
  func.func @transform_4(%arg0: i32, %arg1: i32) -> (i32, i32, i32) {
    %c1_i32 = arith.constant 1 : i32
    %0 = arith.muli %arg0, %c1_i32 : i32
    %1 = arith.addi %0, %arg1 : i32
    %c0_i32 = arith.constant 0 : i32
    %c0_i32_0 = arith.constant 0 : i32
    %c0_i32_1 = arith.constant 0 : i32
    return %1, %c0_i32, %c0_i32_0 : i32, i32, i32
  }
  func.func @transform_5(%arg0: i32, %arg1: i32) -> (i32, i32, i32) {
    %c1_i32 = arith.constant 1 : i32
    %0 = arith.muli %arg0, %c1_i32 : i32
    %1 = arith.addi %0, %arg1 : i32
    %c0_i32 = arith.constant 0 : i32
    %c0_i32_0 = arith.constant 0 : i32
    %c0_i32_1 = arith.constant 0 : i32
    return %1, %c0_i32, %c0_i32_0 : i32, i32, i32
  }
}

</mosaic_0001>

<bundles_post_ra>
// kernel: tpu_custom_call.1
= control target key start
LH: loop header
LB: loop body
LE: loop exit
PB: predicated region body
PF: predicated region fallthrough
CT: control target
= control target key end

     0   :  { %11 = vsyncpa [#allocation3], 0  ;;  %s860_s0 = inlined_call_operand.vmem [shape: bf16[2,36,128], index: 0, kind: input, shape index: {}]   ;;  %s861_s1 = inlined_call_operand.vmem [shape: bf16[8,36], index: 1, kind: input, shape index: {}]   ;;  %s862_s2 = inlined_call_operand.vmem [shape: f32[8,1], index: 2, kind: input, shape index: {}]   ;;  %s863_s3 = inlined_call_operand.hbm [shape: f32[2,8,128], index: 3, kind: output, shape index: {0}]   ;;  %s864_s4 = inlined_call_operand.vmem [shape: f32[2,8,1], index: 4, kind: output, shape index: {1}]   ;;  %s865_s5 = inlined_call_operand.vmem [shape: f32[2,8,1], index: 5, kind: output, shape index: {2}]  }
   0x1   :  { %13 = vsyncpa [#allocation3 + $0x1], 0  ;;  %s738_s18 = smov 0   ;;  %s740_s19 = smov 0  }
   0x2   :  { %s742_s20 = smov 0   ;;  %s744_s21 = smov 0  }
   0x3   :  { %s746_s22 = smov 0   ;;  %s748_s23 = smov 0  }
   0x4 LB: > { %s529_s24 = sadd.s32 4294967295, %s702_s23   ;;  %s530_s25 = sadd.s32 4294967294, %s702_s23   ;;  %s702_s23 = sphi %s748_s23, %s19_s23   ;;  %s698_s22 = sphi %s746_s22, %s872_s22   ;;  %s694_s21 = sphi %s744_s21, %s871_s21   ;;  %s690_s20 = sphi %s742_s20, %s870_s20   ;;  %s686_s19 = sphi %s740_s19, %s869_s19   ;;  %s682_s18 = sphi %s738_s18, %s868_s18  }
   0x5   : > { %s31_s26 = sadd.s32 1, %s698_s22  ;;  %s110_s27 = sadd.s32 1, %s690_s20 }
   0x6   : > { %p33_p0 = scmp.ge.s32.totalorder %s31_s26, 2  ;;  %p120_p1 = scmp.ne.s32.totalorder %s690_s20, %s686_s19 }
   0x7   : > { %p121_p2 = scmp.eq.s32.totalorder %s529_s24, 1  ;;  %p126_p3 = scmp.ne.s32.totalorder %s686_s19, %s682_s18 }
   0x8   : > { %s874_s26 = smov (%p33_p0, %s31_s26), 0  ;;  %p127_p5 = scmp.eq.s32.totalorder %s530_s25, 1 }
   0x9   : > { %p778_p4 = por %p121_p2, %p120_p1  ;;  %s105_s29 = ssub.s32 %s698_s22, %s874_s26 }
   0xa   : > { %p533_p6 = scmp.ge.s32.totalorder %s702_s23, 1  ;;  %p108_p7 = scmp.eq.s32.totalorder %s105_s29, 0 }
   0xb   : > { %p785_p8 = por %p127_p5, %p126_p3  ;;  %p218_p9 = scmp.lt.s32.totalorder %s702_s23, 3 }
   0xc   : > { %s791_s6 = scalar_select %p108_p7, %s690_s20, %s110_s27  }
   0xd   : > { %p219_p10 = pnand %p533_p6, %p218_p9 }
   0xe   : > { %p259_p11 = scmp.lt.s32.totalorder (!%p219_p10), %s694_s21, 1  ;;  %v704_v0 = vmov (!%p219_p10), 0.0   ;;  %vm705_vm0 = vmmov (!%p219_p10), 0   ;;  %v364_v1 = vld [vmem:[%s862_s2] sm:$0xff] (!%p219_p10)  ;;  %v706_v2 = vmov (!%p219_p10), 0   ;;  %vm305_vm1 = vcmask (!%p219_p10), 1041408  }
   0xf   : > { %222 = sbr.rel (%p219_p10) target bundleno = 399 (0x18f), region = 32  ;;  %550 = vmatprep.subr.bf16.mxu0 (!%p219_p10), %v704_v0  ;;  %556 = vmatprep.mubr.msk.bf16.mxu0 (!%p219_p10), %vm705_vm0, %v704_v0  ;;  %v280_v7 = vld [vmem:[%s861_s1] sm:$0xf] (!%p219_p10)  ;;  %vm301_vm2 = vcmask (!%p219_p10), 293888   ;;  %v349_v8 = vlaneseq (!%p219_p10)  ;;  %s242_s16 = sand.u32 (!%p219_p10), 1, %s686_s19  }
  0x10   : > { %619 = vset.pattern.permute.xlu1 (!%p219_p10), %v706_v2  ;;  %620 = vset.pattern.permute.xlu0 (!%p219_p10), %v706_v2  ;;  %s534_s17 = sshll.u32 (!%p219_p10), %s242_s16, 3  ;;  %s543_s25 = sshll.u32 (!%p219_p10), %s694_s21, 7 }
  0x11   : > { %367 = vperm.xlu1 (!%p219_p10), %619, %v364_v1   ;;  %v350_v9 = vand.u32 (!%p219_p10), 127, %v349_v8  ;;  %s244_s24 = scalar_lea.vmem (!%p219_p10), [#allocation2], %s534_s17  ;;  %s812_s8 = scalar_lea.hbm (!%p219_p10), %s863_s3, %s543_s25 }
  0x12   : > { %s397_s27 = sshll.u32 (!%p219_p10), %s244_s24, 4  ;;  %s707_s12 = smov (!%p219_p10), [#allocation2]   ;;  %s398_s27 = int_to_ptr.vmem [resolvable:$true] %s397_s27 }
  0x13   : > { %vm354_vm3 = vcmp.lt.s32.totalorder (!%p219_p10), %v350_v9, 64  ;;  %s624_s11 = scalar_lea.vmem (!%p219_p10), %s398_s27, 128 }
  0x14   : > { %p625_p12 = scmp.ne.s32.totalorder (!%p219_p10), %s398_s27, %s624_s11 }
  0x16   : > { %s798_s9 = scalar_select %p259_p11, %s694_s21, 1 }
  0x17   : > { %p626_p13 = pnand %p625_p12, %p778_p4 }
  0x18   : > { %s560_s10 = smul.u32 20, %s798_s9 }
  0x19   : > { %p627_p0 = pneg %p626_p13 }
  0x1a   : > { %s266_s13 = scalar_lea.vmem %s860_s0, %s560_s10  ;;  %s373_s10 = scalar_lea.sflag [#allocation3], %s242_s16 }
  0x1b   : > { %v621_v3 = vld [vmem:[%s266_s13] sm:$0xff]   ;;  %v622_v4 = vld [vmem:[%s266_s13 + $0x8] sm:$0xff]   ;;  %v623_v5 = vld [vmem:[%s266_s13 + $0x10] ss:$0 sps:$4 sm:$0x33]   ;;  %s628_s13 = sshll.u32 %s707_s12, 4  ;;  %s629_s13 = int_to_ptr.vmem [resolvable:$false] %s628_s13 }
  0x1c   : > { %551 = vmatpush3.bf16.msra.mxu0 %v621_v3  ;;  %v307_v6 = vsel %vm305_vm1, %v623_v5, 0  ;;  %s630_s14 = scalar_lea.vmem %s629_s13, 256  ;;  %p631_p1 = scmp.lt.s32.totalorder %s398_s27, %s629_s13 }
  0x1d   : > { %552 = vmatprep.subr.bf16.mxu0 %v704_v0  ;;  %p632_p2 = scmp.lt.s32.totalorder %s630_s14, %s624_s11 }
  0x1f   : > { %p633_p3 = por %p632_p2, %p631_p1 }
  0x20   : > { %553 = vmatpush3.bf16.msra.mxu0 %v622_v4 }
  0x21   : > { %554 = vmatprep.subr.bf16.mxu0 %v704_v0  ;;  %p634_p5 = pnand %p633_p3, %p627_p0 }
  0x24   : > { %555 = vmatpush3.bf16.msra.mxu0 %v307_v6 }
  0x27   : > { %557 = vmatmul.mubr.msk.bf16.vlgmr.msra.gmra.mrb[0].mxu0 %vm301_vm2, %v280_v7 }
  0x90   : > { %v368_v10 = vpop.permute.xlu1 %367 }
  0xfa   : > { %v343_v11 = vpop.f32.mrb[0].mxu0 }
  0xfb   : > { %v370_v12 = vadd.f32 %v368_v10, %v343_v11  ;;  %v558_v13 = vpop.f32.mrb[1].mxu0  ;;  %v355_v14 = vsel %vm354_vm3, %v343_v11, 0.0 }
  0xfc   : > { %356 = vadd.xlane.f32.xlu0 %v355_v14  ;;  %v346_v15 = vpop.f32.mrb[2].mxu0  ;;  %v360_v17 = vmul.f32 %v355_v14, %v355_v14 }
  0xfd   : > { %v559_v16 = vpop.f32.mrb[3].mxu0  ;;  %371 = vst [vmem:[%s244_s24] sm:$0xff] %v370_v12 }
 0x100   : > { %361 = vadd.xlane.f32.xlu0 %v360_v17 }
 0x101   : > { %637 = shalt.err (!%p634_p5)
}
 0x102   : > { %s638_s21 = scalar_lea.hbm %s812_s8, 128  ;;  %s642_s17 = scalar_lea.hbm %s863_s3, 256 }
 0x103   : > { %p639_p6 = scmp.ne.s32.totalorder %s812_s8, %s638_s21  ;;  %p643_p10 = scmp.lt.u32.totalorder %s812_s8, %s863_s3 }
 0x104   : > { %p644_p11 = scmp.lt.u32.totalorder %s642_s17, %s638_s21  ;;  %p646_p13 = scmp.lt.u32.totalorder %s638_s21, %s812_s8 }
 0x105   : > { %p640_p7 = pnand %p639_p6, %p778_p4 }
 0x106   : > { %p645_p12 = por %p644_p11, %p643_p10 }
 0x107   : > { %p641_p9 = pneg %p640_p7 }
 0x108   : > { %p647_p0 = por %p646_p13, %p645_p12 }
 0x10a   : > { %p648_p1 = pnand %p647_p0, %p641_p9 }
 0x10c   : > { %651 = shalt.err (!%p648_p1)
}
 0x10d   : > { %561 = dma.vmem_to_hbm [thread:$0]  (%p778_p4), %s398_s27, 128, %s812_s8, %s373_s10   ;;  %vm358_vm4 = vcmask 7168  }
 0x10e   : > { %s536_s29 = sshll.u32 %s798_s9, 3 }
 0x10f   : > { %s271_s12 = scalar_lea.vmem %s864_s4, %s536_s29  ;;  %s277_s21 = scalar_lea.vmem %s865_s5, %s536_s29 }
 0x189   : > { %v357_v18 = vpop.xlane.xlu0 %356 }
 0x18a   : > { %359 = vst.msk [vmem:[%s271_s12] sm:$0xff] %vm358_vm4, %v357_v18 }
 0x18d   : > { %v362_v19 = vpop.xlane.xlu0 %361 }
 0x18e   : > { %363 = vst.msk [vmem:[%s277_s21] sm:$0xff] %vm358_vm4, %v362_v19 }
 0x18f PF: > { %p567_p2 = scmp.ge.s32.totalorder %s702_s23, 2  ;;  %s417_s28 = sand.u32 1, %s682_s18  }
 0x190   : > { %s418_s9 = scalar_lea.sflag [#allocation3], %s417_s28 }
 0x191   : > { %p564_p4 = pnand %p567_p2, %p785_p8 }
 0x193   : > { %677 = dma.done.wait (!%p564_p4), %s418_s9, 128  }
 0x194   : > { %679 = vsyncadd (!%p564_p4), %s418_s9, 4294967168  ;;  %s19_s23 = sadd.s32 1, %s702_s23   ;;  %s868_s18 = smov %s686_s19 }
 0x195   : > { %p16_p3 = scmp.ge.s32.totalorder %s19_s23, 4   ;;  %s869_s19 = smov %s690_s20 }
 0x196   : > { %s870_s20 = smov %s791_s6  ;;  %s871_s21 = smov %s698_s22 }
 0x197   : > { %s872_s22 = smov %s874_s26  ;;  %18 = sbr.rel (!%p16_p3) target bundleno = 4 (0x4), region = 91 }
 0x19e   :  { %439 = vsyncpa [#allocation3], 1 }
 0x19f   :  { %441 = vsyncpa [#allocation3 + $0x1], 1 }

</bundles_post_ra>
